<compile_context>
chip_gen: v5e
topology: v5e:2x2
jax: 0.10.0
libtpu: 0.0.40
codegen_flags: <defaults>
</compile_context>

<pallas_src>
import math
from functools import partial

import jax
import jax.numpy as jnp
from jax import lax
from jax.experimental import pallas as pl
from jax.experimental.pallas import tpu as pltpu


def _mhsa_kernel(x_ref, w_ref, o_ref, out_scratch, *, num_heads, dk, dv, dim_k):
    # x_ref      : (1, n, dim_in)          current batch element
    # w_ref      : (2*dim_k+dim_v, dim_in) bf16, grid-resident: [Wq*norm ; Wk ; Wv]
    # o_ref      : (1, n, dim_v)           output slab for this batch element
    # out_scratch: (n, dim_v) f32          staging buffer for one dense final store
    x = x_ref[0].astype(jnp.bfloat16)            # (n, dim_in)
    w = w_ref[...]                               # (2*dim_k+dim_v, dim_in), already bf16

    # Single fused QKV projection for all heads (nn.Linear, no bias: y = x @ W.T).
    proj = lax.dot_general(
        x, w,
        dimension_numbers=(((1,), (1,)), ((), ())),   # contract dim_in vs dim_in
        preferred_element_type=jnp.float32,
    ).astype(jnp.bfloat16)                       # (n, 2*dim_k + dim_v)

    # Move heads to a leading axis once (static slices + axis-0 stack); downstream
    # per-head access is leading-axis indexing / a batch dim of dot_general.
    q3 = jnp.stack([proj[:, h * dk:(h + 1) * dk]
                    for h in range(num_heads)], axis=0)            # (nh, n, dk) bf16
    k3 = jnp.stack([proj[:, dim_k + h * dk: dim_k + (h + 1) * dk]
                    for h in range(num_heads)], axis=0)            # (nh, n, dk) bf16
    v3 = jnp.stack([proj[:, 2 * dim_k + h * dv: 2 * dim_k + (h + 1) * dv]
                    for h in range(num_heads)], axis=0)            # (nh, n, dv) bf16

    # Head-batched scores matmul (norm_fact already folded into the q weights).
    scores = jnp.einsum('hqd,hkd->hqk', q3, k3,
                        preferred_element_type=jnp.float32)        # (nh, n, n) f32

    # Numerically-stable softmax in f32; normalization deferred off the (n, n) tile.
    m = jnp.max(scores, axis=-1, keepdims=True)                    # (nh, n, 1)
    e = jnp.exp(scores - m)                                        # (nh, n, n)
    denom = jnp.sum(e, axis=-1, keepdims=True)                     # (nh, n, 1)

    # Head-batched (softmax-unnormalized) @ V, f32 accumulation on the MXU.
    att_un = jnp.einsum('hqk,hkd->hqd', e.astype(jnp.bfloat16), v3,
                        preferred_element_type=jnp.float32)        # (nh, n, dv) f32
    att = att_un * pl.reciprocal(denom, approx=False)              # exact normalization

    # Interleave heads along the feature axis (== att.transpose(1,2).reshape(...)):
    # per-head writes into the f32 scratch, then ONE dense (n, dim_v) store to o_ref.
    for h in range(num_heads):                                     # static, traced once
        out_scratch[:, h * dv:(h + 1) * dv] = att[h]
    o_ref[0] = out_scratch[...].astype(o_ref.dtype)


def multi_head_self_attention(x, wq, wk, wv, num_heads):
    """x: (batch, n, dim_in); wq/wk: (dim_k, dim_in); wv: (dim_v, dim_in)."""
    batch, n, dim_in = x.shape
    dim_k = wq.shape[0]
    dim_v = wv.shape[0]
    assert dim_k % num_heads == 0 and dim_v % num_heads == 0
    dk = dim_k // num_heads
    dv = dim_v // num_heads
    norm_fact = 1.0 / math.sqrt(dk)

    # Wrapper-side weight prep: fold norm_fact into Wq, concat [Wq;Wk;Wv], pre-cast bf16.
    w_all = jnp.concatenate([wq * norm_fact, wk, wv], axis=0).astype(jnp.bfloat16)
    f_dim = 2 * dim_k + dim_v                         # rows of the fused weight slab

    kernel = partial(_mhsa_kernel, num_heads=num_heads, dk=dk, dv=dv, dim_k=dim_k)

    # Explicit scoped-VMEM limit: ~75% of the chip's capacity, capped at 100 MiB
    # (=> ~48 MiB on v7x's 64 MiB VMEM, ~96 MiB on v5e/v6e's 128 MiB).
    try:
        vmem_cap = int(pltpu.get_tpu_info().vmem_capacity_bytes)
    except Exception:
        vmem_cap = 64 * 1024 * 1024
    vmem_limit = min((vmem_cap * 3) // 4, 100 * 1024 * 1024)

    # Advisory cost estimate for XLA's scheduler around the custom call.
    flops = 2 * batch * (n * dim_in * f_dim + num_heads * (n * n * dk + n * n * dv))
    transcendentals = batch * num_heads * n * n
    bytes_accessed = (x.size * x.dtype.itemsize
                      + w_all.size * w_all.dtype.itemsize
                      + batch * n * dim_v * x.dtype.itemsize)

    out = pl.pallas_call(
        kernel,
        out_shape=jax.ShapeDtypeStruct((batch, n, dim_v), x.dtype),
        grid_spec=pltpu.PrefetchScalarGridSpec(
            num_scalar_prefetch=0,
            grid=(batch,),
            in_specs=[
                pl.BlockSpec((1, n, dim_in), lambda b: (b, 0, 0)),
                # Full bf16 weight slab, same block every step -> VMEM-resident.
                pl.BlockSpec((f_dim, dim_in), lambda b: (0, 0)),
            ],
            out_specs=pl.BlockSpec((1, n, dim_v), lambda b: (b, 0, 0)),
            scratch_shapes=[pltpu.VMEM((n, dim_v), jnp.float32)],
        ),
        compiler_params=pltpu.CompilerParams(
            dimension_semantics=("parallel",),       # batch shards across TCs on v7x
            vmem_limit_bytes=int(vmem_limit),
        ),
        cost_estimate=pl.CostEstimate(
            flops=int(flops),
            transcendentals=int(transcendentals),
            bytes_accessed=int(bytes_accessed),
        ),
    )(x, w_all)
    return out


def _reference(x, wq, wk, wv, num_heads):
    """Pure-JAX f32 reference mirroring the PyTorch forward."""
    batch, n, dim_in = x.shape
    dim_k, dim_v = wq.shape[0], wv.shape[0]
    dk, dv = dim_k // num_heads, dim_v // num_heads
    q = (x @ wq.T).reshape(batch, n, num_heads, dk).transpose(0, 2, 1, 3)
    k = (x @ wk.T).reshape(batch, n, num_heads, dk).transpose(0, 2, 1, 3)
    v = (x @ wv.T).reshape(batch, n, num_heads, dv).transpose(0, 2, 1, 3)
    dist = (q @ k.transpose(0, 1, 3, 2)) * (1.0 / math.sqrt(dk))
    dist = jax.nn.softmax(dist, axis=-1)
    att = dist @ v
    return att.transpose(0, 2, 1, 3).reshape(batch, n, dim_v)


if __name__ == "__main__":
    # Small shapes consistent with the module: batch=2, seq=8, dim_in=32,
    # dim_k=32, dim_v=32, num_heads=8 (so dk=dv=4).
    batch, n, dim_in = 2, 8, 32
    dim_k, dim_v, num_heads = 32, 32, 8

    key = jax.random.PRNGKey(0)
    kx, kq, kk, kv = jax.random.split(key, 4)

    x = jax.random.normal(kx, (batch, n, dim_in), dtype=jnp.float32)
    # Deterministic nn.Linear-style init (uniform in +/- 1/sqrt(fan_in)).
    bound = 1.0 / math.sqrt(dim_in)
    wq = jax.random.uniform(kq, (dim_k, dim_in), jnp.float32, -bound, bound)
    wk = jax.random.uniform(kk, (dim_k, dim_in), jnp.float32, -bound, bound)
    wv = jax.random.uniform(kv, (dim_v, dim_in), jnp.float32, -bound, bound)

    out = multi_head_self_attention(x, wq, wk, wv, num_heads)
    out = jax.block_until_ready(out)

    ref = _reference(x, wq, wk, wv, num_heads)
    assert out.shape == (batch, n, dim_v)
    # bf16 MXU inputs (f32 accumulation, exact softmax normalization) -> loose tolerance.
    assert jnp.allclose(out, ref, atol=2e-2, rtol=2e-2), float(
        jnp.max(jnp.abs(out - ref)))

    print("KERNEL_OK")
</pallas_src>

<mosaic_0001>
module attributes {stable_mosaic.version = 11 : i64} {
  func.func @_mhsa_kernel(%arg0: i32, %arg1: memref<1x8x32xf32, #tpu.memory_space<vmem>>, %arg2: memref<96x32xbf16, #tpu.memory_space<vmem>>, %arg3: memref<1x8x32xf32, #tpu.memory_space<vmem>>, %arg4: memref<8x32xf32, #tpu.memory_space<vmem>>) attributes {dimension_semantics = [#tpu.dimension_semantics<parallel>], iteration_bounds = array<i64: 2>, scalar_prefetch = 0 : i64, scratch_operands = 1 : i64, tpu.core_type = #tpu.core_type<tc>, window_params = [{transform_indices = @transform_0, window_bounds = array<i64: 1, 8, 32>}, {pipeline_mode = #tpu.pipeline_mode<synchronous>, transform_indices = @transform_1, window_bounds = array<i64: 96, 32>}, {transform_indices = @transform_2, window_bounds = array<i64: 1, 8, 32>}]} {
    %c0 = arith.constant 0 : index
    %c0_0 = arith.constant 0 : index
    %c0_1 = arith.constant 0 : index
    %0 = vector.load %arg1[%c0, %c0_0, %c0_1] : memref<1x8x32xf32, #tpu.memory_space<vmem>>, vector<1x8x32xf32>
    %1 = vector.shape_cast %0 : vector<1x8x32xf32> to vector<8x32xf32>
    %2 = arith.truncf %1 : vector<8x32xf32> to vector<8x32xbf16>
    %c0_2 = arith.constant 0 : index
    %c0_3 = arith.constant 0 : index
    %3 = vector.load %arg2[%c0_2, %c0_3] : memref<96x32xbf16, #tpu.memory_space<vmem>>, vector<96x32xbf16>
    %cst = arith.constant dense<0.000000e+00> : vector<8x96xf32>
    %4 = tpu.matmul %2, %3, %cst {dimension_numbers = #tpu.dot_dimension_numbers<[1], [1], [0], [0], [0, 0, 1, 0], [], []>} : vector<8x32xbf16>, vector<96x32xbf16>, vector<8x96xf32> -> vector<8x96xf32>
    %5 = arith.truncf %4 : vector<8x96xf32> to vector<8x96xbf16>
    %6 = vector.extract_strided_slice %5 {offsets = [0, 0], sizes = [8, 4], strides = [1, 1]} : vector<8x96xbf16> to vector<8x4xbf16>
    %7 = vector.extract_strided_slice %5 {offsets = [0, 4], sizes = [8, 4], strides = [1, 1]} : vector<8x96xbf16> to vector<8x4xbf16>
    %8 = vector.extract_strided_slice %5 {offsets = [0, 8], sizes = [8, 4], strides = [1, 1]} : vector<8x96xbf16> to vector<8x4xbf16>
    %9 = vector.extract_strided_slice %5 {offsets = [0, 12], sizes = [8, 4], strides = [1, 1]} : vector<8x96xbf16> to vector<8x4xbf16>
    %10 = vector.extract_strided_slice %5 {offsets = [0, 16], sizes = [8, 4], strides = [1, 1]} : vector<8x96xbf16> to vector<8x4xbf16>
    %11 = vector.extract_strided_slice %5 {offsets = [0, 20], sizes = [8, 4], strides = [1, 1]} : vector<8x96xbf16> to vector<8x4xbf16>
    %12 = vector.extract_strided_slice %5 {offsets = [0, 24], sizes = [8, 4], strides = [1, 1]} : vector<8x96xbf16> to vector<8x4xbf16>
    %13 = vector.extract_strided_slice %5 {offsets = [0, 28], sizes = [8, 4], strides = [1, 1]} : vector<8x96xbf16> to vector<8x4xbf16>
    %14 = vector.shape_cast %6 : vector<8x4xbf16> to vector<1x8x4xbf16>
    %15 = vector.shape_cast %7 : vector<8x4xbf16> to vector<1x8x4xbf16>
    %16 = vector.shape_cast %8 : vector<8x4xbf16> to vector<1x8x4xbf16>
    %17 = vector.shape_cast %9 : vector<8x4xbf16> to vector<1x8x4xbf16>
    %18 = vector.shape_cast %10 : vector<8x4xbf16> to vector<1x8x4xbf16>
    %19 = vector.shape_cast %11 : vector<8x4xbf16> to vector<1x8x4xbf16>
    %20 = vector.shape_cast %12 : vector<8x4xbf16> to vector<1x8x4xbf16>
    %21 = vector.shape_cast %13 : vector<8x4xbf16> to vector<1x8x4xbf16>
    %22 = tpu.concatenate %14, %15, %16, %17, %18, %19, %20, %21 in 0 : vector<1x8x4xbf16>, vector<1x8x4xbf16>, vector<1x8x4xbf16>, vector<1x8x4xbf16>, vector<1x8x4xbf16>, vector<1x8x4xbf16>, vector<1x8x4xbf16>, vector<1x8x4xbf16> -> vector<8x8x4xbf16>
    %23 = vector.extract_strided_slice %5 {offsets = [0, 32], sizes = [8, 4], strides = [1, 1]} : vector<8x96xbf16> to vector<8x4xbf16>
    %24 = vector.extract_strided_slice %5 {offsets = [0, 36], sizes = [8, 4], strides = [1, 1]} : vector<8x96xbf16> to vector<8x4xbf16>
    %25 = vector.extract_strided_slice %5 {offsets = [0, 40], sizes = [8, 4], strides = [1, 1]} : vector<8x96xbf16> to vector<8x4xbf16>
    %26 = vector.extract_strided_slice %5 {offsets = [0, 44], sizes = [8, 4], strides = [1, 1]} : vector<8x96xbf16> to vector<8x4xbf16>
    %27 = vector.extract_strided_slice %5 {offsets = [0, 48], sizes = [8, 4], strides = [1, 1]} : vector<8x96xbf16> to vector<8x4xbf16>
    %28 = vector.extract_strided_slice %5 {offsets = [0, 52], sizes = [8, 4], strides = [1, 1]} : vector<8x96xbf16> to vector<8x4xbf16>
    %29 = vector.extract_strided_slice %5 {offsets = [0, 56], sizes = [8, 4], strides = [1, 1]} : vector<8x96xbf16> to vector<8x4xbf16>
    %30 = vector.extract_strided_slice %5 {offsets = [0, 60], sizes = [8, 4], strides = [1, 1]} : vector<8x96xbf16> to vector<8x4xbf16>
    %31 = vector.shape_cast %23 : vector<8x4xbf16> to vector<1x8x4xbf16>
    %32 = vector.shape_cast %24 : vector<8x4xbf16> to vector<1x8x4xbf16>
    %33 = vector.shape_cast %25 : vector<8x4xbf16> to vector<1x8x4xbf16>
    %34 = vector.shape_cast %26 : vector<8x4xbf16> to vector<1x8x4xbf16>
    %35 = vector.shape_cast %27 : vector<8x4xbf16> to vector<1x8x4xbf16>
    %36 = vector.shape_cast %28 : vector<8x4xbf16> to vector<1x8x4xbf16>
    %37 = vector.shape_cast %29 : vector<8x4xbf16> to vector<1x8x4xbf16>
    %38 = vector.shape_cast %30 : vector<8x4xbf16> to vector<1x8x4xbf16>
    %39 = tpu.concatenate %31, %32, %33, %34, %35, %36, %37, %38 in 0 : vector<1x8x4xbf16>, vector<1x8x4xbf16>, vector<1x8x4xbf16>, vector<1x8x4xbf16>, vector<1x8x4xbf16>, vector<1x8x4xbf16>, vector<1x8x4xbf16>, vector<1x8x4xbf16> -> vector<8x8x4xbf16>
    %40 = vector.extract_strided_slice %5 {offsets = [0, 64], sizes = [8, 4], strides = [1, 1]} : vector<8x96xbf16> to vector<8x4xbf16>
    %41 = vector.extract_strided_slice %5 {offsets = [0, 68], sizes = [8, 4], strides = [1, 1]} : vector<8x96xbf16> to vector<8x4xbf16>
    %42 = vector.extract_strided_slice %5 {offsets = [0, 72], sizes = [8, 4], strides = [1, 1]} : vector<8x96xbf16> to vector<8x4xbf16>
    %43 = vector.extract_strided_slice %5 {offsets = [0, 76], sizes = [8, 4], strides = [1, 1]} : vector<8x96xbf16> to vector<8x4xbf16>
    %44 = vector.extract_strided_slice %5 {offsets = [0, 80], sizes = [8, 4], strides = [1, 1]} : vector<8x96xbf16> to vector<8x4xbf16>
    %45 = vector.extract_strided_slice %5 {offsets = [0, 84], sizes = [8, 4], strides = [1, 1]} : vector<8x96xbf16> to vector<8x4xbf16>
    %46 = vector.extract_strided_slice %5 {offsets = [0, 88], sizes = [8, 4], strides = [1, 1]} : vector<8x96xbf16> to vector<8x4xbf16>
    %47 = vector.extract_strided_slice %5 {offsets = [0, 92], sizes = [8, 4], strides = [1, 1]} : vector<8x96xbf16> to vector<8x4xbf16>
    %48 = vector.shape_cast %40 : vector<8x4xbf16> to vector<1x8x4xbf16>
    %49 = vector.shape_cast %41 : vector<8x4xbf16> to vector<1x8x4xbf16>
    %50 = vector.shape_cast %42 : vector<8x4xbf16> to vector<1x8x4xbf16>
    %51 = vector.shape_cast %43 : vector<8x4xbf16> to vector<1x8x4xbf16>
    %52 = vector.shape_cast %44 : vector<8x4xbf16> to vector<1x8x4xbf16>
    %53 = vector.shape_cast %45 : vector<8x4xbf16> to vector<1x8x4xbf16>
    %54 = vector.shape_cast %46 : vector<8x4xbf16> to vector<1x8x4xbf16>
    %55 = vector.shape_cast %47 : vector<8x4xbf16> to vector<1x8x4xbf16>
    %56 = tpu.concatenate %48, %49, %50, %51, %52, %53, %54, %55 in 0 : vector<1x8x4xbf16>, vector<1x8x4xbf16>, vector<1x8x4xbf16>, vector<1x8x4xbf16>, vector<1x8x4xbf16>, vector<1x8x4xbf16>, vector<1x8x4xbf16>, vector<1x8x4xbf16> -> vector<8x8x4xbf16>
    "tpu.trace_start"() <{level = 10 : i32, message = "hqd,hkd->hqk"}> : () -> ()
    %cst_4 = arith.constant dense<0.000000e+00> : vector<8x8x8xf32>
    %57 = tpu.matmul %22, %39, %cst_4 {dimension_numbers = #tpu.dot_dimension_numbers<[2], [2], [1], [1], [0, 0, 0, 1, 1, 1], [0], [0]>} : vector<8x8x4xbf16>, vector<8x8x4xbf16>, vector<8x8x8xf32> -> vector<8x8x8xf32>
    "tpu.trace_stop"() : () -> ()
    %cst_5 = arith.constant dense<0xFF800000> : vector<8x8xf32>
    %58 = vector.multi_reduction <maximumf>, %57, %cst_5 [2] : vector<8x8x8xf32> to vector<8x8xf32>
    %59 = vector.shape_cast %58 : vector<8x8xf32> to vector<8x8x1xf32>
    %60 = vector.broadcast %59 : vector<8x8x1xf32> to vector<8x8x8xf32>
    %61 = arith.subf %57, %60 : vector<8x8x8xf32>
    %62 = math.exp %61 : vector<8x8x8xf32>
    %cst_6 = arith.constant dense<0.000000e+00> : vector<8x8xf32>
    %63 = vector.multi_reduction <add>, %62, %cst_6 [2] : vector<8x8x8xf32> to vector<8x8xf32>
    %64 = vector.shape_cast %63 : vector<8x8xf32> to vector<8x8x1xf32>
    %65 = arith.truncf %62 : vector<8x8x8xf32> to vector<8x8x8xbf16>
    "tpu.trace_start"() <{level = 10 : i32, message = "hqk,hkd->hqd"}> : () -> ()
    %cst_7 = arith.constant dense<0.000000e+00> : vector<8x8x4xf32>
    %66 = tpu.matmul %65, %56, %cst_7 {dimension_numbers = #tpu.dot_dimension_numbers<[2], [1], [1], [2], [0, 0, 0, 1, 1, 2], [0], [0]>} : vector<8x8x8xbf16>, vector<8x8x4xbf16>, vector<8x8x4xf32> -> vector<8x8x4xf32>
    "tpu.trace_stop"() : () -> ()
    %67 = tpu.reciprocal %64 : vector<8x8x1xf32> -> vector<8x8x1xf32>
    %68 = vector.broadcast %67 : vector<8x8x1xf32> to vector<8x8x4xf32>
    %69 = arith.mulf %66, %68 : vector<8x8x4xf32>
    %70 = vector.extract_strided_slice %69 {offsets = [0, 0, 0], sizes = [1, 8, 4], strides = [1, 1, 1]} : vector<8x8x4xf32> to vector<1x8x4xf32>
    %71 = vector.shape_cast %70 : vector<1x8x4xf32> to vector<8x4xf32>
    %c0_8 = arith.constant 0 : index
    %c0_9 = arith.constant 0 : index
    %72 = vector.load %arg4[%c0_8, %c0_9] : memref<8x32xf32, #tpu.memory_space<vmem>>, vector<8x4xf32>
    tpu.vector_store %arg4[%c0_8, %c0_9], %71 {strides = array<i32>} : memref<8x32xf32, #tpu.memory_space<vmem>>, vector<8x4xf32>,
    %73 = vector.extract_strided_slice %69 {offsets = [1, 0, 0], sizes = [1, 8, 4], strides = [1, 1, 1]} : vector<8x8x4xf32> to vector<1x8x4xf32>
    %74 = vector.shape_cast %73 : vector<1x8x4xf32> to vector<8x4xf32>
    %c0_10 = arith.constant 0 : index
    %c4 = arith.constant 4 : index
    %75 = vector.load %arg4[%c0_10, %c4] : memref<8x32xf32, #tpu.memory_space<vmem>>, vector<8x4xf32>
    tpu.vector_store %arg4[%c0_10, %c4], %74 {strides = array<i32>} : memref<8x32xf32, #tpu.memory_space<vmem>>, vector<8x4xf32>,
    %76 = vector.extract_strided_slice %69 {offsets = [2, 0, 0], sizes = [1, 8, 4], strides = [1, 1, 1]} : vector<8x8x4xf32> to vector<1x8x4xf32>
    %77 = vector.shape_cast %76 : vector<1x8x4xf32> to vector<8x4xf32>
    %c0_11 = arith.constant 0 : index
    %c8 = arith.constant 8 : index
    %78 = vector.load %arg4[%c0_11, %c8] : memref<8x32xf32, #tpu.memory_space<vmem>>, vector<8x4xf32>
    tpu.vector_store %arg4[%c0_11, %c8], %77 {strides = array<i32>} : memref<8x32xf32, #tpu.memory_space<vmem>>, vector<8x4xf32>,
    %79 = vector.extract_strided_slice %69 {offsets = [3, 0, 0], sizes = [1, 8, 4], strides = [1, 1, 1]} : vector<8x8x4xf32> to vector<1x8x4xf32>
    %80 = vector.shape_cast %79 : vector<1x8x4xf32> to vector<8x4xf32>
    %c0_12 = arith.constant 0 : index
    %c12 = arith.constant 12 : index
    %81 = vector.load %arg4[%c0_12, %c12] : memref<8x32xf32, #tpu.memory_space<vmem>>, vector<8x4xf32>
    tpu.vector_store %arg4[%c0_12, %c12], %80 {strides = array<i32>} : memref<8x32xf32, #tpu.memory_space<vmem>>, vector<8x4xf32>,
    %82 = vector.extract_strided_slice %69 {offsets = [4, 0, 0], sizes = [1, 8, 4], strides = [1, 1, 1]} : vector<8x8x4xf32> to vector<1x8x4xf32>
    %83 = vector.shape_cast %82 : vector<1x8x4xf32> to vector<8x4xf32>
    %c0_13 = arith.constant 0 : index
    %c16 = arith.constant 16 : index
    %84 = vector.load %arg4[%c0_13, %c16] : memref<8x32xf32, #tpu.memory_space<vmem>>, vector<8x4xf32>
    tpu.vector_store %arg4[%c0_13, %c16], %83 {strides = array<i32>} : memref<8x32xf32, #tpu.memory_space<vmem>>, vector<8x4xf32>,
    %85 = vector.extract_strided_slice %69 {offsets = [5, 0, 0], sizes = [1, 8, 4], strides = [1, 1, 1]} : vector<8x8x4xf32> to vector<1x8x4xf32>
    %86 = vector.shape_cast %85 : vector<1x8x4xf32> to vector<8x4xf32>
    %c0_14 = arith.constant 0 : index
    %c20 = arith.constant 20 : index
    %87 = vector.load %arg4[%c0_14, %c20] : memref<8x32xf32, #tpu.memory_space<vmem>>, vector<8x4xf32>
    tpu.vector_store %arg4[%c0_14, %c20], %86 {strides = array<i32>} : memref<8x32xf32, #tpu.memory_space<vmem>>, vector<8x4xf32>,
    %88 = vector.extract_strided_slice %69 {offsets = [6, 0, 0], sizes = [1, 8, 4], strides = [1, 1, 1]} : vector<8x8x4xf32> to vector<1x8x4xf32>
    %89 = vector.shape_cast %88 : vector<1x8x4xf32> to vector<8x4xf32>
    %c0_15 = arith.constant 0 : index
    %c24 = arith.constant 24 : index
    %90 = vector.load %arg4[%c0_15, %c24] : memref<8x32xf32, #tpu.memory_space<vmem>>, vector<8x4xf32>
    tpu.vector_store %arg4[%c0_15, %c24], %89 {strides = array<i32>} : memref<8x32xf32, #tpu.memory_space<vmem>>, vector<8x4xf32>,
    %91 = vector.extract_strided_slice %69 {offsets = [7, 0, 0], sizes = [1, 8, 4], strides = [1, 1, 1]} : vector<8x8x4xf32> to vector<1x8x4xf32>
    %92 = vector.shape_cast %91 : vector<1x8x4xf32> to vector<8x4xf32>
    %c0_16 = arith.constant 0 : index
    %c28 = arith.constant 28 : index
    %93 = vector.load %arg4[%c0_16, %c28] : memref<8x32xf32, #tpu.memory_space<vmem>>, vector<8x4xf32>
    tpu.vector_store %arg4[%c0_16, %c28], %92 {strides = array<i32>} : memref<8x32xf32, #tpu.memory_space<vmem>>, vector<8x4xf32>,
    %c0_17 = arith.constant 0 : index
    %c0_18 = arith.constant 0 : index
    %94 = vector.load %arg4[%c0_17, %c0_18] : memref<8x32xf32, #tpu.memory_space<vmem>>, vector<8x32xf32>
    %c0_19 = arith.constant 0 : index
    %c0_20 = arith.constant 0 : index
    %c0_21 = arith.constant 0 : index
    %95 = vector.load %arg3[%c0_19, %c0_20, %c0_21] : memref<1x8x32xf32, #tpu.memory_space<vmem>>, vector<1x8x32xf32>
    %96 = vector.shape_cast %95 : vector<1x8x32xf32> to vector<8x32xf32>
    %97 = vector.shape_cast %94 : vector<8x32xf32> to vector<1x8x32xf32>
    tpu.vector_store %arg3[%c0_19, %c0_20, %c0_21], %97 {strides = array<i32>} : memref<1x8x32xf32, #tpu.memory_space<vmem>>, vector<1x8x32xf32>,
    return
  }
  func.func @transform_0(%arg0: i32) -> (i32, i32, i32) {
    %c0_i32 = arith.constant 0 : i32
    %c0_i32_0 = arith.constant 0 : i32
    %c0_i32_1 = arith.constant 0 : i32
    return %arg0, %c0_i32, %c0_i32_0 : i32, i32, i32
  }
  func.func @transform_1(%arg0: i32) -> (i32, i32) {
    %c0_i32 = arith.constant 0 : i32
    %c0_i32_0 = arith.constant 0 : i32
    %c0_i32_1 = arith.constant 0 : i32
    return %c0_i32, %c0_i32_0 : i32, i32
  }
  func.func @transform_2(%arg0: i32) -> (i32, i32, i32) {
    %c0_i32 = arith.constant 0 : i32
    %c0_i32_0 = arith.constant 0 : i32
    %c0_i32_1 = arith.constant 0 : i32
    return %arg0, %c0_i32, %c0_i32_0 : i32, i32, i32
  }
}

</mosaic_0001>

<bundles_post_ra>
// kernel: tpu_custom_call.1
= control target key start
LH: loop header
LB: loop body
LE: loop exit
PB: predicated region body
PF: predicated region fallthrough
CT: control target
= control target key end

     0   :  { %7 = vsyncpa [#allocation4], 0  ;;  %s1423_s0 = inlined_call_operand.vmem [shape: f32[2,8,32], index: 0, kind: input, shape index: {}]   ;;  %s1424_s1 = inlined_call_operand.vmem [shape: bf16[96,32], index: 1, kind: input, shape index: {}]   ;;  %s1425_s2 = inlined_call_operand.hbm [shape: f32[2,8,32], index: 2, kind: output, shape index: {}]  }
   0x1   :  { %9 = vsyncpa [#allocation4 + $0x1], 0  ;;  %s1149_s9 = smov 0   ;;  %s1151_s10 = smov 0  }
   0x2   :  { %s1153_s11 = smov 0   ;;  %s1155_s12 = smov 0  }
   0x3 LB: > { %s1170_s13 = sadd.s32 4294967295, %s1116_s12   ;;  %s910_s14 = sadd.s32 4294967294, %s1116_s12   ;;  %s1116_s12 = sphi %s1155_s12, %s1435_s12   ;;  %s1112_s11 = sphi %s1153_s11, %s1434_s11   ;;  %s1108_s10 = sphi %s1151_s10, %s1433_s10   ;;  %s1104_s9 = sphi %s1149_s9, %s1432_s9  }
   0x4   : > { %s1174_s15 = sadd.s32 1, %s1116_s12   ;;  %s69_s16 = sadd.s32 1, %s1112_s11 }
   0x5   : > { %s66_s17 = ssub.s32 %s1116_s12, %s1174_s15  ;;  %p79_p0 = scmp.ne.s32.totalorder %s1112_s11, %s1108_s10 }
   0x6   : > { %p67_p1 = scmp.eq.s32.totalorder %s66_s17, 0  ;;  %p80_p2 = scmp.eq.s32.totalorder %s1170_s13, 1 }
   0x7   : > { %p85_p3 = scmp.ne.s32.totalorder %s1108_s10, %s1104_s9  ;;  %p86_p4 = scmp.eq.s32.totalorder %s910_s14, 1 }
   0x8   : > { %s1185_s18 = scalar_select %p67_p1, %s1112_s11, %s69_s16  }
   0x9   : > { %p1187_p5 = por %p80_p2, %p79_p0  ;;  %p1191_p6 = por %p86_p4, %p85_p3 }
   0xa   : > { %p913_p7 = scmp.ge.s32.totalorder %s1116_s12, 1  ;;  %p114_p8 = scmp.lt.s32.totalorder %s1116_s12, 3 }
   0xc   : > { %p115_p9 = pnand %p913_p7, %p114_p8 }
   0xd   : > { %p135_p10 = scmp.lt.s32.totalorder (!%p115_p9), %s1170_s13, 1  ;;  %s1118_s16 = smov (!%p115_p9), 100  }
   0xe   : > { %118 = sbr.rel (%p115_p9) target bundleno = 995 (0x3e3), region = 28  ;;  %s1119_s17 = smov (!%p115_p9), 112  }
   0xf   : > { %s1120_s21 = smov (!%p115_p9), 124   ;;  %s1121_s22 = smov (!%p115_p9), 108  }
  0x10   : > { %s1122_s23 = smov (!%p115_p9), 116   ;;  %s1123_s24 = smov (!%p115_p9), 120  }
  0x11   : > { %s1124_s25 = smov (!%p115_p9), 96   ;;  %s1125_s26 = smov (!%p115_p9), 104  }
  0x12   : > { %s1126_s27 = smov (!%p115_p9), 64   ;;  %s1127_s28 = smov (!%p115_p9), 12  }
  0x13   : > { %v966_v0 = vld [vmem:[%s1424_s1 + $0x28] sm:$0xff]  ;;  %vm184_vm0 = vcmask 261120   ;;  %v965_v2 = vld [vmem:[%s1424_s1 + $0x20] sm:$0xff]  ;;  %v964_v4 = vld [vmem:[%s1424_s1 + $0x18] sm:$0xff]  ;;  %s136_s3 = scalar_select %p135_p10, %s1170_s13, 1  ;;  %vm239_vm1 = vcmask 31744  }
  0x14   : > { %v204_v1 = vsel %vm184_vm0, %v966_v0, 0  ;;  %v201_v3 = vsel %vm184_vm0, %v965_v2, 0  ;;  %v198_v5 = vsel %vm184_vm0, %v964_v4, 0  ;;  %v963_v6 = vld [vmem:[%s1424_s1 + $0x10] sm:$0xff]  ;;  %v962_v8 = vld [vmem:[%s1424_s1 + $0x8] sm:$0xff]  ;;  %v961_v10 = vld [vmem:[%s1424_s1] sm:$0xff] }
  0x15   : > { %208 = vmatpush.bf16.xpose.msra.mxu0 %v204_v1  ;;  %v195_v7 = vsel %vm184_vm0, %v963_v6, 0  ;;  %v192_v9 = vsel %vm184_vm0, %v962_v8, 0  ;;  %s915_s6 = sshll.u32 %s136_s3, 3  ;;  %v189_v11 = vsel %vm184_vm0, %v961_v10, 0  ;;  %vm420_vm2 = vcmask 64512   ;;  %s1128_s29 = smov 8  }
  0x16   : > { %s138_s14 = scalar_lea.vmem %s1423_s0, %s915_s6  ;;  %vm506_vm3 = vcmask 1043456   ;;  %s1129_s30 = smov 4  }
  0x17   : > { %v140_v12 = vld [vmem:[%s138_s14] sm:$0xff]  ;;  %s1130_s3 = smov 24   ;;  %s1131_s4 = smov 16  }
  0x18   : > { %v141_v13 = vpack.c.bf16 %v140_v12, %v140_v12  ;;  %s1132_s5 = smov 20   ;;  %s1133_s6 = smov 28  }
  0x19   : > { %s132_s7 = sand.u32 1, %s1108_s10   ;;  %s958_s14 = sshll.u32 %s1170_s13, 3 }
  0x1a   : > { %s914_s8 = sshll.u32 %s132_s7, 3 }
  0x1d   : > { %209 = vmatpush.bf16.xpose.msra.mxu0 %v201_v3 }
  0x25   : > { %210 = vmatpush.bf16.xpose.msra.mxu0 %v198_v5 }
  0x2d   : > { %211 = vmatpush.bf16.xpose.msra.mxu0 %v195_v7 }
  0x35   : > { %212 = vmatpush.bf16.xpose.msra.mxu0 %v192_v9 }
  0x3d   : > { %213 = vmatpush.bf16.xpose.msra.mxu0 %v189_v11 }
  0x44   : > { %940 = vmatmul.msk.bf16.vlgmr.msra.gmra.mxu0 %vm184_vm0, %v141_v13 }
  0xc1   : > { %v215_v14 = vpop.f32.mrf.mxu0 }
  0xc2   : > { %v219_v15 = vpack.c.bf16 %v215_v14, %v215_v14 }
  0xc4   : > { %233 = vrot.lane.b32.xlu2 %v219_v15, %s1118_s16  ;;  %227 = vrot.lane.b32.xlu1 %v219_v15, %s1119_s17  ;;  %v235_v17 = vunpack.c.l.b16 %v219_v15 }
  0xc5   : > { %221 = vrot.lane.b32.xlu0 %v219_v15, %s1120_s21  ;;  %s846_s21 = scalar_lea.hbm %s1425_s2, %s958_s14 }
  0xc6   : > { %v236_v18 = vpack.c.b16 %v235_v17, %v235_v17 }
  0xc9   : > { %v217_v16 = vpop.f32.mrf.mxu0 }
  0xcc   : > { %229 = vrot.lane.b32.xlu2 %v219_v15, %s1121_s22  ;;  %225 = vrot.lane.b32.xlu1 %v219_v15, %s1122_s23  ;;  %s134_s22 = scalar_lea.vmem [#allocation3], %s914_s8 }
  0xcd   : > { %223 = vrot.lane.b32.xlu0 %v219_v15, %s1123_s24  ;;  %s848_s23 = sshll.u32 %s134_s22, 4  ;;  %s850_s24 = sshll.u32 %s846_s21, 4  ;;  %s849_s23 = int_to_ptr.vmem [resolvable:$true] %s848_s23  ;;  %s851_s24 = int_to_ptr.hbm [resolvable:$true] %s850_s24 }
  0xd4   : > { %237 = vrot.lane.b32.xlu2 %v236_v18, %s1124_s25 }
  0xd5   : > { %231 = vrot.lane.b32.xlu0 %v219_v15, %s1125_s26  ;;  %s1068_s26 = sshra.s32 %s851_s24, 4  ;;  %s1069_s26 = int_to_ptr.hbm [resolvable:$true] %s1068_s26 }
  0xd6   : > { %p1075_p0 = scmp.lt.s32.totalorder %s1069_s26, %s1425_s2 }
 0x11e   : > { %v1228_v19 = vpop.permute.xlu2 %233 }
 0x11f   : > { %v397_v35 = vunpack.c.l.b16 %v1228_v19 }
 0x121   : > { %v1246_v39 = vpack.c.b16 %v397_v35, %v397_v35 }
 0x126   : > { %v1230_v20 = vpop.permute.xlu2 %229 }
 0x127   : > { %v351_v36 = vunpack.c.l.b16 %v1230_v20 }
 0x129   : > { %v1248_v40 = vpack.c.b16 %v351_v36, %v351_v36 }
 0x12e   : > { %v238_v21 = vpop.permute.xlu2 %237 }
 0x12f   : > { %v244_v22 = vsel %vm239_vm1, %v238_v21, 0 }
 0x130   : > { %253 = vmatpush.bf16.xpose.msra.mxu1 %v244_v22 }
 0x136   : > { %v1233_v23 = vpop.permute.xlu1 %227 }
 0x137   : > { %v222_v24 = vpop.permute.xlu0 %221  ;;  %941 = vmatmul.msk.bf16.vlgmr.msra.gmra.mxu1 %vm239_vm1, %v219_v15  ;;  %v328_v27 = vunpack.c.l.b16 %v1233_v23 }
 0x138   : > { %v259_v25 = vunpack.c.l.b16 %v222_v24 }
 0x139   : > { %v1238_v33 = vpack.c.b16 %v328_v27, %v328_v27 }
 0x13a   : > { %v260_v26 = vpack.c.b16 %v259_v25, %v259_v25 }
 0x13c   : > { %261 = vrot.lane.b32.xlu1 %v260_v26, %s1124_s25 }
 0x13e   : > { %v226_v28 = vpop.permute.xlu1 %225 }
 0x13f   : > { %v305_v29 = vunpack.c.l.b16 %v226_v28  ;;  %v224_v30 = vpop.permute.xlu0 %223 }
 0x140   : > { %v282_v31 = vunpack.c.l.b16 %v224_v30 }
 0x141   : > { %v306_v32 = vpack.c.b16 %v305_v29, %v305_v29 }
 0x142   : > { %v283_v34 = vpack.c.b16 %v282_v31, %v282_v31 }
 0x143   : > { %307 = vrot.lane.b32.xlu2 %v306_v32, %s1124_s25 }
 0x144   : > { %330 = vrot.lane.b32.xlu1 %v1238_v33, %s1124_s25  ;;  %284 = vrot.lane.b32.xlu0 %v283_v34, %s1124_s25 }
 0x147   : > { %v232_v37 = vpop.permute.xlu0 %231 }
 0x148   : > { %v374_v38 = vunpack.c.l.b16 %v232_v37 }
 0x14a   : > { %v375_v41 = vpack.c.b16 %v374_v38, %v374_v38 }
 0x14c   : > { %353 = vrot.lane.b32.xlu1 %v1248_v40, %s1124_s25  ;;  %399 = vrot.lane.b32.xlu0 %v1246_v39, %s1124_s25 }
 0x14d   : > { %376 = vrot.lane.b32.xlu2 %v375_v41, %s1124_s25  ;;  %s836_s25 = scalar_lea.sflag [#allocation4], %s132_s7 }
 0x154   : > { %544 = vrot.lane.b32.xlu0 %v283_v34, %s1126_s27  ;;  %501 = vrot.lane.b32.xlu1 %v236_v18, %s1126_s27 }
 0x155   : > { %565 = vrot.lane.b32.xlu2 %v306_v32, %s1126_s27 }
 0x15c   : > { %628 = vrot.lane.b32.xlu0 %v375_v41, %s1126_s27  ;;  %523 = vrot.lane.b32.xlu1 %v260_v26, %s1126_s27 }
 0x19d   : > { %v308_v42 = vpop.permute.xlu2 %307 }
 0x19e   : > { %v313_v43 = vsel %vm239_vm1, %v308_v42, 0 }
 0x19f   : > { %322 = vmatpush.bf16.xpose.msrb.mxu1 %v313_v43 }
 0x1a6   : > { %944 = vmatmul.msk.bf16.vlgmr.msrb.gmra.mxu1 %vm239_vm1, %v226_v28 }
 0x1a7   : > { %v377_v44 = vpop.permute.xlu2 %376 }
 0x1a8   : > { %v382_v45 = vsel %vm239_vm1, %v377_v44, 0 }
 0x1a9   : > { %391 = vmatpush.bf16.xpose.msra.mxu1 %v382_v45 }
 0x1ae   : > { %v262_v46 = vpop.permute.xlu1 %261 }
 0x1af   : > { %v267_v47 = vsel %vm239_vm1, %v262_v46, 0  ;;  %v566_v63 = vpop.permute.xlu2 %565 }
 0x1b0   : > { %276 = vmatpush.bf16.xpose.msra.mxu2 %v267_v47  ;;  %v571_v1 = vsel %vm506_vm3, %v566_v63, 0 }
 0x1b4   : > { %v255_v48 = vpop.f32.mrf.mxu1 }
 0x1b5   : > { %v421_v49 = vsel %vm420_vm2, %v255_v48, -inf }
 0x1b6   : > { %v331_v50 = vpop.permute.xlu1 %330  ;;  %v285_v51 = vpop.permute.xlu0 %284  ;;  %422 = vmax.xlane.f32.xlu0 %v421_v49  ;;  %947 = vmatmul.msk.bf16.vlgmr.msra.gmra.mxu1 %vm239_vm1, %v232_v37 }
 0x1b7   : > { %942 = vmatmul.msk.bf16.vlgmr.msra.gmra.mxu2 %vm239_vm1, %v222_v24  ;;  %v290_v52 = vsel %vm239_vm1, %v285_v51, 0  ;;  %v336_v53 = vsel %vm239_vm1, %v331_v50, 0 }
 0x1b8   : > { %299 = vmatpush.bf16.xpose.msra.mxu3 %v290_v52  ;;  %345 = vmatpush.bf16.xpose.msrb.mxu2 %v336_v53 }
 0x1bc   : > { %v257_v54 = vpop.f32.mrf.mxu1 }
 0x1be   : > { %v354_v55 = vpop.permute.xlu1 %353  ;;  %v400_v56 = vpop.permute.xlu0 %399 }
 0x1bf   : > { %v405_v57 = vsel %vm239_vm1, %v400_v56, 0  ;;  %943 = vmatmul.msk.bf16.vlgmr.msra.gmra.mxu3 %vm239_vm1, %v224_v30  ;;  %v359_v58 = vsel %vm239_vm1, %v354_v55, 0 }
 0x1c0   : > { %368 = vmatpush.bf16.xpose.msrb.mxu3 %v359_v58  ;;  %414 = vmatpush.bf16.xpose.msra.mxu2 %v405_v57 }
 0x1c6   : > { %v545_v59 = vpop.permute.xlu0 %544  ;;  %v502_v60 = vpop.permute.xlu1 %501 }
 0x1c7   : > { %v550_v61 = vsel %vm506_vm3, %v545_v59, 0  ;;  %v508_v62 = vsel %vm506_vm3, %v502_v60, 0  ;;  %945 = vmatmul.msk.bf16.vlgmr.msrb.gmra.mxu2 %vm239_vm1, %v1233_v23 }
 0x1c8   : > { %517 = vmatpush.bf16.msra.mxu3 %v508_v62  ;;  %559 = vmatpush.bf16.msrb.mxu2 %v550_v61 }
 0x1ce   : > { %v524_v0 = vpop.permute.xlu1 %523  ;;  %v629_v3 = vpop.permute.xlu0 %628 }
 0x1cf   : > { %v529_v2 = vsel %vm506_vm3, %v524_v0, 0  ;;  %946 = vmatmul.msk.bf16.vlgmr.msrb.gmra.mxu3 %vm239_vm1, %v1230_v20  ;;  %v634_v4 = vsel %vm506_vm3, %v629_v3, 0 }
 0x1d0   : > { %580 = vmatpush.bf16.msrb.mxu3 %v571_v1  ;;  %538 = vmatpush.bf16.msrb.mxu1 %v529_v2 }
 0x1d7   : > { %948 = vmatmul.msk.bf16.vlgmr.msra.gmra.mxu2 %vm239_vm1, %v1228_v19 }
 0x1d8   : > { %643 = vmatpush.bf16.msra.mxu2 %v634_v4 }
 0x223   : > { %v324_v5 = vpop.f32.mrf.mxu1 }
 0x224   : > { %v430_v6 = vsel %vm420_vm2, %v324_v5, -inf }
 0x225   : > { %431 = vmax.xlane.f32.xlu1 %v430_v6 }
 0x229   : > { %v423_v7 = vpop.xlane.xlu0 %422 }
 0x22a   : > { %v445_v8 = vsub.f32 %v255_v48, %v423_v7 }
 0x22b   : > { %v326_v9 = vpop.f32.mrf.mxu1 }
 0x22c   : > { %v453_v10 = vmul.f32 1.442695, %v445_v8 }
 0x22e   : > { %1022 = vpow2.f32 %v453_v10 }
 0x233   : > { %v393_v11 = vpop.f32.mrf.mxu1 }
 0x234   : > { %v1284_v12 = vpop.eup %1022  ;;  %v439_v13 = vsel %vm420_vm2, %v393_v11, -inf }
 0x235   : > { %v493_v14 = vpack.c.bf16 %v1284_v12, %v1284_v12  ;;  %440 = vmax.xlane.f32.xlu0 %v439_v13 }
 0x237   : > { %949 = vmatmul.msk.bf16.vlgmr.msra.gmra.mxu3 %vm420_vm2, %v493_v14 }
 0x23a   : > { %v278_v15 = vpop.f32.mrf.mxu2 }
 0x23b   : > { %v395_v16 = vpop.f32.mrf.mxu1  ;;  %v424_v22 = vsel %vm420_vm2, %v278_v15, -inf }
 0x242   : > { %v280_v17 = vpop.f32.mrf.mxu2  ;;  %v301_v18 = vpop.f32.mrf.mxu3 }
 0x243   : > { %v427_v19 = vsel %vm420_vm2, %v301_v18, -inf  ;;  %v469_v17 = vsel %vm420_vm2, %v1284_v12, 0.0 }
 0x244   : > { %428 = vmax.xlane.f32.xlu2 %v427_v19 }
 0x24a   : > { %v303_v20 = vpop.f32.mrf.mxu3  ;;  %v347_v21 = vpop.f32.mrf.mxu2 }
 0x24b   : > { %v433_v23 = vsel %vm420_vm2, %v347_v21, -inf }
 0x24c   : > { %425 = vmax.xlane.f32.xlu2 %v424_v22  ;;  %434 = vmax.xlane.f32.xlu1 %v433_v23 }
 0x252   : > { %v349_v24 = vpop.f32.mrf.mxu2  ;;  %v370_v25 = vpop.f32.mrf.mxu3 }
 0x253   : > { %v436_v26 = vsel %vm420_vm2, %v370_v25, -inf }
 0x254   : > { %437 = vmax.xlane.f32.xlu0 %v436_v26 }
 0x25a   : > { %v372_v27 = vpop.f32.mrf.mxu3  ;;  %v416_v28 = vpop.f32.mrf.mxu2 }
 0x25b   : > { %v442_v29 = vsel %vm420_vm2, %v416_v28, -inf }
 0x25c   : > { %443 = vmax.xlane.f32.xlu2 %v442_v29 }
 0x262   : > { %v418_v30 = vpop.f32.mrf.mxu2 }
 0x265   : > { %586 = vrot.lane.b32.xlu1 %v1238_v33, %s1126_s27 }
 0x268   : > { %607 = vrot.lane.b32.xlu0 %v1248_v40, %s1126_s27 }
 0x274   : > { %649 = vrot.lane.b32.xlu2 %v1246_v39, %s1126_s27  ;;  %s1070_s27 = scalar_lea.hbm %s1069_s26, 8 }
 0x275   : > { %p1071_p11 = scmp.ne.s32.totalorder %s1069_s26, %s1070_s27 }
 0x277   : > { %p1072_p12 = pnand %p1071_p11, %p1187_p5 }
 0x279   : > { %p1073_p13 = pneg %p1072_p12 }
 0x298   : > { %v432_v31 = vpop.xlane.xlu1 %431 }
 0x299   : > { %v448_v32 = vsub.f32 %v324_v5, %v432_v31 }
 0x29b   : > { %v459_v34 = vmul.f32 1.442695, %v448_v32 }
 0x29d   : > { %1024 = vpow2.f32 %v459_v34 }
 0x2a3   : > { %v1025_v35 = vpop.eup %1024 }
 0x2a4   : > { %v496_v36 = vpack.c.bf16 %v1025_v35, %v1025_v35  ;;  %v478_v37 = vsel %vm420_vm2, %v1025_v35, 0.0 }
 0x2a5   : > { %479 = vadd.xlane.f32.xlu1 %v478_v37 }
 0x2a6   : > { %952 = vmatmul.msk.bf16.vlgmr.msrb.gmra.mxu3 %vm420_vm2, %v496_v36 }
 0x2a8   : > { %v441_v38 = vpop.xlane.xlu0 %440 }
 0x2a9   : > { %v451_v41 = vsub.f32 %v393_v11, %v441_v38 }
 0x2ab   : > { %v465_v33 = vmul.f32 1.442695, %v451_v41 }
 0x2ad   : > { %1026 = vpow2.f32 %v465_v33 }
 0x2b3   : > { %v1027_v42 = vpop.eup %1026 }
 0x2b4   : > { %v487_v40 = vsel %vm420_vm2, %v1027_v42, 0.0  ;;  %v499_v3 = vpack.c.bf16 %v1027_v42, %v1027_v42 }
 0x2b5   : > { %488 = vadd.xlane.f32.xlu1 %v487_v40 }
 0x2b7   : > { %v429_v39 = vpop.xlane.xlu2 %428 }
 0x2b8   : > { %v447_v43 = vsub.f32 %v301_v18, %v429_v39 }
 0x2ba   : > { %v457_v44 = vmul.f32 1.442695, %v447_v43  ;;  %v1304_v45 = vpop.f32.mrf.mxu3 }
 0x2bc   : > { %1028 = vpow2.f32 %v457_v44 }
 0x2bf   : > { %v426_v46 = vpop.xlane.xlu2 %425  ;;  %v435_v47 = vpop.xlane.xlu1 %434 }
 0x2c0   : > { %v446_v48 = vsub.f32 %v278_v15, %v426_v46  ;;  %v449_v53 = vsub.f32 %v347_v21, %v435_v47 }
 0x2c2   : > { %v1029_v49 = vpop.eup %1028  ;;  %v455_v50 = vmul.f32 1.442695, %v446_v48  ;;  %v521_v51 = vpop.f32.mrf.mxu3  ;;  %v461_v55 = vmul.f32 1.442695, %v449_v53 }
 0x2c3   : > { %v495_v52 = vpack.c.bf16 %v1029_v49, %v1029_v49  ;;  %v475_v54 = vsel %vm420_vm2, %v1029_v49, 0.0 }
 0x2c4   : > { %476 = vadd.xlane.f32.xlu0 %v475_v54  ;;  %1030 = vpow2.f32 %v455_v50 }
 0x2c5   : > { %951 = vmatmul.msk.bf16.vlgmr.msrb.gmra.mxu2 %vm420_vm2, %v495_v52  ;;  %1032 = vpow2.f32 %v461_v55 }
 0x2c7   : > { %v438_v56 = vpop.xlane.xlu0 %437 }
 0x2c8   : > { %v450_v57 = vsub.f32 %v370_v25, %v438_v56 }
 0x2ca   : > { %v463_v58 = vmul.f32 1.442695, %v450_v57  ;;  %v1031_v59 = vpop.eup %1030 }
 0x2cb   : > { %v494_v60 = vpack.c.bf16 %v1031_v59, %v1031_v59  ;;  %v472_v61 = vsel %vm420_vm2, %v1031_v59, 0.0  ;;  %v1033_v0 = vpop.eup %1032 }
 0x2cc   : > { %1034 = vpow2.f32 %v463_v58  ;;  %473 = vadd.xlane.f32.xlu2 %v472_v61  ;;  %v481_v5 = vsel %vm420_vm2, %v1033_v0, 0.0  ;;  %v497_v13 = vpack.c.bf16 %v1033_v0, %v1033_v0 }
 0x2cd   : > { %950 = vmatmul.msk.bf16.vlgmr.msrb.gmra.mxu1 %vm420_vm2, %v494_v60 }
 0x2cf   : > { %v444_v62 = vpop.xlane.xlu2 %443 }
 0x2d0   : > { %v452_v63 = vsub.f32 %v416_v28, %v444_v62 }
 0x2d2   : > { %v1035_v1 = vpop.eup %1034  ;;  %v467_v2 = vmul.f32 1.442695, %v452_v63 }
 0x2d3   : > { %v484_v4 = vsel %vm420_vm2, %v1035_v1, 0.0  ;;  %v498_v18 = vpack.c.bf16 %v1035_v1, %v1035_v1 }
 0x2d4   : > { %1036 = vpow2.f32 %v467_v2  ;;  %485 = vadd.xlane.f32.xlu0 %v484_v4  ;;  %482 = vadd.xlane.f32.xlu2 %v481_v5 }
 0x2d5   : > { %955 = vmatmul.msk.bf16.vlgmr.msra.gmra.mxu2 %vm420_vm2, %v499_v3 }
 0x2d7   : > { %v587_v6 = vpop.permute.xlu1 %586  ;;  %v650_v7 = vpop.permute.xlu2 %649 }
 0x2d8   : > { %v655_v8 = vsel %vm506_vm3, %v650_v7, 0  ;;  %v592_v9 = vsel %vm506_vm3, %v587_v6, 0 }
 0x2d9   : > { %601 = vmatpush.bf16.msrb.mxu0 %v592_v9  ;;  %664 = vmatpush.bf16.msra.mxu3 %v655_v8 }
 0x2da   : > { %v1037_v10 = vpop.eup %1036  ;;  %v608_v11 = vpop.permute.xlu0 %607 }
 0x2db   : > { %v500_v14 = vpack.c.bf16 %v1037_v10, %v1037_v10  ;;  %v613_v15 = vsel %vm506_vm3, %v608_v11, 0  ;;  %v490_v16 = vsel %vm420_vm2, %v1037_v10, 0.0 }
 0x2dc   : > { %953 = vmatmul.msk.bf16.vlgmr.msrb.gmra.mxu0 %vm420_vm2, %v497_v13  ;;  %622 = vmatpush.bf16.msra.mxu1 %v613_v15 }
 0x2dd   : > { %470 = vadd.xlane.f32.xlu0 %v469_v17  ;;  %491 = vadd.xlane.f32.xlu2 %v490_v16 }
 0x2de   : > { %956 = vmatmul.msk.bf16.vlgmr.msra.gmra.mxu3 %vm420_vm2, %v500_v14 }
 0x2df   : > { %954 = vmatmul.msk.bf16.vlgmr.msra.gmra.mxu1 %vm420_vm2, %v498_v18 }
 0x318   : > { %v480_v19 = vpop.xlane.xlu1 %479 }
 0x319   : > { %1038 = vrcp.f32 %v480_v19  ;;  %v723_v23 = vand.u32 2147483648, %v480_v19  ;;  %v721_v25 = vand.u32 2147483647, %v480_v19  ;;  %vm717_vm5 = vweird.f32 %v480_v19 }
 0x31b   : > { %v724_v12 = vor.u32 1.1754944e-38, %v723_v23  ;;  %vm722_vm7 = vcmp.eq.f32.partialorder %v721_v25, 8.507059e+37 }
 0x31f   : > { %v1039_v20 = vpop.eup %1038 }
 0x320   : > { %v713_v21 = vmul.f32 %v1039_v20, %v480_v19  ;;  %vm718_vm4 = vweird.f32 %v1039_v20 }
 0x321   : > { %vm719_vm6 = vmor %vm717_vm5, %vm718_vm4 }
 0x322   : > { %v714_v22 = vsub.f32 1.0, %v713_v21 }
 0x324   : > { %v715_v24 = vmul.f32 %v1039_v20, %v714_v22 }
 0x326   : > { %v716_v26 = vadd.f32 %v1039_v20, %v715_v24 }
 0x328   : > { %v720_v27 = vsel %vm719_vm6, %v1039_v20, %v716_v26  ;;  %v1322_v34 = vpop.xlane.xlu1 %488 }
 0x329   : > { %v582_v28 = vpop.f32.mrf.mxu3  ;;  %v725_v29 = vsel %vm722_vm7, %v724_v12, %v720_v27  ;;  %vm759_vm2 = vweird.f32 %v1322_v34  ;;  %v765_v14 = vand.u32 2147483648, %v1322_v34  ;;  %v763_v17 = vand.u32 2147483647, %v1322_v34 }
 0x32a   : > { %v785_v30 = vmul.f32 %v725_v29, %v582_v28 }
 0x32b   : > { %v766_v26 = vor.u32 1.1754944e-38, %v765_v14 }
 0x32c   : > { %804 = vrot.lane.b32.xlu0 %v785_v30, %s1127_s28 }
 0x331   : > { %v584_v31 = vpop.f32.mrf.mxu3 }
 0x337   : > { %v477_v32 = vpop.xlane.xlu0 %476 }
 0x338   : > { %1040 = vrcp.f32 %v477_v32  ;;  %v709_v41 = vand.u32 2147483648, %v477_v32  ;;  %v707_v40 = vand.u32 2147483647, %v477_v32  ;;  %vm703_vm9 = vweird.f32 %v477_v32 }
 0x339   : > { %1042 = vrcp.f32 %v1322_v34 }
 0x33a   : > { %v710_v44 = vor.u32 1.1754944e-38, %v709_v41  ;;  %vm708_vm11 = vcmp.eq.f32.partialorder %v707_v40, 8.507059e+37 }
 0x33e   : > { %v1041_v35 = vpop.eup %1040 }
 0x33f   : > { %v699_v36 = vmul.f32 %v1041_v35, %v477_v32  ;;  %v474_v37 = vpop.xlane.xlu2 %473  ;;  %v1325_v33 = vpop.eup %1042  ;;  %vm704_vm8 = vweird.f32 %v1041_v35 }
 0x340   : > { %1044 = vrcp.f32 %v474_v37  ;;  %v755_v43 = vmul.f32 %v1325_v33, %v1322_v34  ;;  %vm705_vm10 = vmor %vm703_vm9, %vm704_vm8  ;;  %v695_v57 = vand.u32 2147483648, %v474_v37  ;;  %v693_v59 = vand.u32 2147483647, %v474_v37 }
 0x341   : > { %v700_v38 = vsub.f32 1.0, %v699_v36  ;;  %vm689_vm13 = vweird.f32 %v474_v37  ;;  %vm760_vm3 = vweird.f32 %v1325_v33 }
 0x342   : > { %v756_v54 = vsub.f32 1.0, %v755_v43  ;;  %v696_v1 = vor.u32 1.1754944e-38, %v695_v57  ;;  %vm694_vm15 = vcmp.eq.f32.partialorder %v693_v59, 8.507059e+37  ;;  %vm1357_vm5 = vmor %vm759_vm2, %vm760_vm3 }
 0x343   : > { %v701_v42 = vmul.f32 %v1041_v35, %v700_v38 }
 0x344   : > { %v757_v62 = vmul.f32 %v1325_v33, %v756_v54 }
 0x345   : > { %v702_v39 = vadd.f32 %v1041_v35, %v701_v42 }
 0x346   : > { %v1045_v46 = vpop.eup %1044  ;;  %v758_v11 = vadd.f32 %v1325_v33, %v757_v62 }
 0x347   : > { %v1329_v47 = vpop.xlane.xlu0 %485  ;;  %v706_v48 = vsel %vm705_vm10, %v1041_v35, %v702_v39  ;;  %v685_v49 = vmul.f32 %v1045_v46, %v474_v37  ;;  %v1332_v50 = vpop.xlane.xlu2 %482  ;;  %vm690_vm12 = vweird.f32 %v1045_v46  ;;  %vm764_vm10 = vcmp.eq.f32.partialorder %v763_v17, 8.507059e+37 }
 0x348   : > { %1046 = vrcp.f32 %v1329_v47  ;;  %v561_v51 = vpop.f32.mrf.mxu2  ;;  %v711_v52 = vsel %vm708_vm11, %v710_v44, %v706_v48  ;;  %vm691_vm14 = vmor %vm689_vm13, %vm690_vm12  ;;  %v737_v15 = vand.u32 2147483648, %v1332_v50  ;;  %v735_v19 = vand.u32 2147483647, %v1332_v50 }
 0x349   : > { %1048 = vrcp.f32 %v1332_v50  ;;  %v784_v53 = vmul.f32 %v711_v52, %v561_v51  ;;  %v686_v55 = vsub.f32 1.0, %v685_v49  ;;  %v751_v22 = vand.u32 2147483648, %v1329_v47 }
 0x34a   : > { %v540_v56 = vpop.f32.mrf.mxu1  ;;  %v762_v23 = vsel %vm1357_vm5, %v1325_v33, %v758_v11  ;;  %vm731_vm7 = vweird.f32 %v1332_v50  ;;  %v738_v12 = vor.u32 1.1754944e-38, %v737_v15  ;;  %vm745_vm9 = vweird.f32 %v1329_v47 }
 0x34b   : > { %798 = vrot.lane.b32.xlu2 %v784_v53, %s1128_s29  ;;  %v687_v58 = vmul.f32 %v1045_v46, %v686_v55  ;;  %v749_v27 = vand.u32 2147483647, %v1329_v47  ;;  %vm736_vm11 = vcmp.eq.f32.partialorder %v735_v19, 8.507059e+37  ;;  %v767_v34 = vsel %vm764_vm10, %v766_v26, %v762_v23  ;;  %s1074_s29 = scalar_lea.hbm %s1425_s2, 16 }
 0x34c   : > { %v752_v38 = vor.u32 1.1754944e-38, %v751_v22  ;;  %vm807_vm10 = vcmask 130144   ;;  %p1076_p1 = scmp.lt.s32.totalorder %s1074_s29, %s1070_s27 }
 0x34d   : > { %v688_v61 = vadd.f32 %v1045_v46, %v687_v58  ;;  %vm750_vm13 = vcmp.eq.f32.partialorder %v749_v27, 8.507059e+37 }
 0x34e   : > { %v1335_v60 = vpop.eup %1046  ;;  %p1077_p2 = por %p1076_p1, %p1075_p0 }
 0x34f   : > { %v1049_v63 = vpop.eup %1048  ;;  %v741_v0 = vmul.f32 %v1335_v60, %v1329_v47  ;;  %v692_v3 = vsel %vm691_vm14, %v1045_v46, %v688_v61  ;;  %vm746_vm6 = vweird.f32 %v1335_v60 }
 0x350   : > { %v727_v2 = vmul.f32 %v1049_v63, %v1332_v50  ;;  %v1341_v4 = vpop.xlane.xlu0 %470  ;;  %v1343_v5 = vpop.xlane.xlu2 %491  ;;  %v697_v7 = vsel %vm694_vm15, %v696_v1, %v692_v3  ;;  %vm732_vm4 = vweird.f32 %v1049_v63  ;;  %vm1373_vm12 = vmor %vm745_vm9, %vm746_vm6  ;;  %vm801_vm9 = vcmask 97344   ;;  %p1078_p3 = pnand %p1077_p2, %p1073_p13 }
 0x351   : > { %v742_v6 = vsub.f32 1.0, %v741_v0  ;;  %1050 = vrcp.f32 %v1341_v4  ;;  %v563_v8 = vpop.f32.mrf.mxu2  ;;  %v783_v10 = vmul.f32 %v697_v7, %v540_v56  ;;  %vm733_vm8 = vmor %vm731_vm7, %vm732_vm4  ;;  %v679_v39 = vand.u32 2147483647, %v1341_v4 }
 0x352   : > { %v728_v9 = vsub.f32 1.0, %v727_v2  ;;  %1052 = vrcp.f32 %v1343_v5  ;;  %v542_v13 = vpop.f32.mrf.mxu1  ;;  %v681_v43 = vand.u32 2147483648, %v1341_v4  ;;  %vm675_vm15 = vweird.f32 %v1341_v4 }
 0x353   : > { %v743_v16 = vmul.f32 %v1335_v60, %v742_v6  ;;  %792 = vrot.lane.b32.xlu1 %v783_v10, %s1129_s30  ;;  %v779_v50 = vand.u32 2147483648, %v1343_v5  ;;  %v777_v53 = vand.u32 2147483647, %v1343_v5  ;;  %vm680_vm4 = vcmp.eq.f32.partialorder %v679_v39, 8.507059e+37 }
 0x354   : > { %v729_v18 = vmul.f32 %v1049_v63, %v728_v9  ;;  %v682_v54 = vor.u32 1.1754944e-38, %v681_v43  ;;  %vm773_vm5 = vweird.f32 %v1343_v5 }
 0x355   : > { %v744_v21 = vadd.f32 %v1335_v60, %v743_v16  ;;  %v780_v59 = vor.u32 1.1754944e-38, %v779_v50  ;;  %vm778_vm7 = vcmp.eq.f32.partialorder %v777_v53, 8.507059e+37 }
 0x356   : > { %v730_v24 = vadd.f32 %v1049_v63, %v729_v18 }
 0x357   : > { %v1051_v25 = vpop.eup %1050  ;;  %v748_v37 = vsel %vm1373_vm12, %v1335_v60, %v744_v21  ;;  %vm819_vm12 = vcmask 195744  }
 0x358   : > { %v671_v28 = vmul.f32 %v1051_v25, %v1341_v4  ;;  %v734_v29 = vsel %vm733_vm8, %v1049_v63, %v730_v24  ;;  %v1053_v31 = vpop.eup %1052  ;;  %vm676_vm14 = vweird.f32 %v1051_v25  ;;  %v753_v48 = vsel %vm750_vm13, %v752_v38, %v748_v37 }
 0x359   : > { %v645_v32 = vpop.f32.mrf.mxu2  ;;  %v603_v35 = vpop.f32.mrf.mxu0  ;;  %v739_v36 = vsel %vm736_vm11, %v738_v12, %v734_v29  ;;  %v769_v33 = vmul.f32 %v1053_v31, %v1343_v5  ;;  %vm774_vm2 = vweird.f32 %v1053_v31  ;;  %vm677_vm3 = vmor %vm675_vm15, %vm676_vm14  ;;  %vm795_vm8 = vcmask 64544  }
 0x35a   : > { %v672_v41 = vsub.f32 1.0, %v671_v28  ;;  %v788_v42 = vmul.f32 %v767_v34, %v645_v32  ;;  %v786_v40 = vmul.f32 %v739_v36, %v603_v35  ;;  %vm775_vm6 = vmor %vm773_vm5, %vm774_vm2  ;;  %vm813_vm11 = vcmask 162944  }
 0x35b   : > { %v770_v46 = vsub.f32 1.0, %v769_v33  ;;  %vm825_vm13 = vcmask 228544  }
 0x35c   : > { %v673_v44 = vmul.f32 %v1051_v25, %v672_v41  ;;  %822 = vrot.lane.b32.xlu2 %v788_v42, %s1130_s3  ;;  %v624_v47 = vpop.f32.mrf.mxu1  ;;  %810 = vrot.lane.b32.xlu1 %v786_v40, %s1131_s4 }
 0x35d   : > { %v787_v49 = vmul.f32 %v753_v48, %v624_v47  ;;  %v771_v52 = vmul.f32 %v1053_v31, %v770_v46 }
 0x35e   : > { %v674_v51 = vadd.f32 %v1051_v25, %v673_v44 }
 0x35f   : > { %816 = vrot.lane.b32.xlu0 %v787_v49, %s1132_s5  ;;  %v772_v55 = vadd.f32 %v1053_v31, %v771_v52 }
 0x360   : > { %v678_v56 = vsel %vm677_vm3, %v1051_v25, %v674_v51 }
 0x361   : > { %v647_v57 = vpop.f32.mrf.mxu2  ;;  %v666_v58 = vpop.f32.mrf.mxu3  ;;  %v683_v60 = vsel %vm680_vm4, %v682_v54, %v678_v56  ;;  %v776_v61 = vsel %vm775_vm6, %v1053_v31, %v772_v55 }
 0x362   : > { %v605_v62 = vpop.f32.mrf.mxu0  ;;  %v782_v63 = vmul.f32 %v683_v60, %v1304_v45  ;;  %v781_v0 = vsel %vm778_vm7, %v780_v59, %v776_v61 }
 0x363   : > { %v789_v1 = vmul.f32 %v781_v0, %v666_v58 }
 0x364   : > { %v626_v2 = vpop.f32.mrf.mxu1  ;;  %790 = vst.msk [vmem:[#allocation2] sm:$0xff] %vm239_vm1, %v782_v63  ;;  %vm831_vm1 = vcmask 261344  }
 0x365   : > { %828 = vrot.lane.b32.xlu1 %v789_v1, %s1133_s6 }
 0x369   : > { %v668_v3 = vpop.f32.mrf.mxu3 }
 0x39e   : > { %v805_v6 = vpop.permute.xlu0 %804 }
 0x3a5   : > { %v799_v5 = vpop.permute.xlu2 %798 }
 0x3b6   : > { %v823_v8 = vpop.permute.xlu2 %822 }
 0x3c5   : > { %v793_v4 = vpop.permute.xlu1 %792 }
 0x3c6   : > { %796 = vst.msk [vmem:[#allocation2] sm:$0xff] %vm795_vm8, %v793_v4 }
 0x3c7   : > { %802 = vst.msk [vmem:[#allocation2] sm:$0xff] %vm801_vm9, %v799_v5 }
 0x3c8   : > { %808 = vst.msk [vmem:[#allocation2] sm:$0xff] %vm807_vm10, %v805_v6 }
 0x3ce   : > { %v811_v45 = vpop.permute.xlu1 %810 }
 0x3cf   : > { %814 = vst.msk [vmem:[#allocation2] sm:$0xff] %vm813_vm11, %v811_v45 }
 0x3d1   : > { %v817_v7 = vpop.permute.xlu0 %816 }
 0x3d2   : > { %820 = vst.msk [vmem:[#allocation2] sm:$0xff] %vm819_vm12, %v817_v7 }
 0x3d3   : > { %826 = vst.msk [vmem:[#allocation2] sm:$0xff] %vm825_vm13, %v823_v8 }
 0x3d7   : > { %v829_v9 = vpop.permute.xlu1 %828 }
 0x3d8   : > { %832 = vst.msk [vmem:[#allocation2] sm:$0xff] %vm831_vm1, %v829_v9 }
 0x3df   : > { %v833_v10 = vld [vmem:[#allocation2] sm:$0xff] }
 0x3e0   : > { %834 = vst.msk [vmem:[%s134_s22] sm:$0xff] %vm184_vm0, %v833_v10 }
 0x3e1   : > { %1081 = shalt.err (!%p1078_p3)
}
 0x3e2   : > { %967 = dma.vmem_to_hbm [thread:$0]  (%p1187_p5), %s849_s23, 128, %s851_s24, %s836_s25  }
 0x3e3 PF: > { %p973_p4 = scmp.ge.s32.totalorder %s1116_s12, 2  ;;  %s862_s4 = sand.u32 1, %s1104_s9  }
 0x3e4   : > { %s863_s5 = scalar_lea.sflag [#allocation4], %s862_s4 }
 0x3e5   : > { %p970_p7 = pnand %p973_p4, %p1191_p6 }
 0x3e7   : > { %p971_p8 = pneg %p970_p7 }
 0x3e9   : > { %1099 = dma.done.wait (%p971_p8), %s863_s5, 128  }
 0x3ea   : > { %1101 = vsyncadd (%p971_p8), %s863_s5, 4294967168  ;;  %p12_p9 = scmp.ge.s32.totalorder %s1174_s15, 4   ;;  %s1432_s9 = smov %s1108_s10 }
 0x3eb   : > { %s1433_s10 = smov %s1112_s11  ;;  %s1434_s11 = smov %s1185_s18 }
 0x3ec   : > { %s1435_s12 = smov %s1174_s15  ;;  %14 = sbr.rel (!%p12_p9) target bundleno = 3 (0x3), region = 63 }
 0x3f1   :  { %869 = vsyncpa [#allocation4], 1 }
 0x3f2   :  { %871 = vsyncpa [#allocation4 + $0x1], 1 }

</bundles_post_ra>
